<compile_context>
chip_gen: v7x
topology: tpu7x:2x2x1
jax: 0.10.0
libtpu: 0.0.40
codegen_flags: <defaults>
</compile_context>

<pallas_src>
import functools

import jax
import jax.numpy as jnp
from jax.experimental import pallas as pl
from jax.experimental.pallas import tpu as pltpu


def _edge_loss_kernel(res_ref, tgt_ref, out_ref, gp_ref, *, H, W, B, TB):
    i = pl.program_id(0)

    # gray() and the conv are both linear => edge(res) - edge(tgt) ==
    # edge(gray(res - tgt)). Compute the difference channel-by-channel to keep
    # live vreg pressure low; cast from the native HBM dtype to f32 in-vreg.
    def chan_diff(c):
        return (res_ref[:, c].astype(jnp.float32)
                - tgt_ref[:, c].astype(jnp.float32))          # (TB, H, W)

    g = (0.2989 * chan_diff(0)
         + 0.587 * chan_diff(1)
         + 0.114 * chan_diff(2))                              # (TB, H, W)

    if B % TB != 0:
        # Last chunk overhangs the batch: mask out garbage entries so they
        # contribute nothing to the partial sum.
        bidx = i * TB + jax.lax.broadcasted_iota(jnp.int32, (TB, H, W), 0)
        g = jnp.where(bidx < B, g, 0.0)

    # Zero-padded grayscale plane in VMEM scratch (conv padding=1 handled
    # here instead of an XLA pad in the wrapper).
    gp_ref[...] = jnp.zeros_like(gp_ref)
    gp_ref[:, 1:H + 1, 1:W + 1] = g
    gp = gp_ref[...]                                          # (TB, H+2, W+2)

    # Separable 3x3: Laplacian weight [[-1,-1,-1],[-1,8,-1],[-1,-1,-1]]
    # == 9*center - (3x3 box sum).
    h3 = gp[:, :, 0:W] + gp[:, :, 1:W + 1] + gp[:, :, 2:W + 2]  # (TB, H+2, W)
    box = h3[:, 0:H] + h3[:, 1:H + 1] + h3[:, 2:H + 2]          # (TB, H, W)
    e = 9.0 * g - box

    # Per-chunk partial sum of squared edge differences.
    out_ref[...] = jnp.sum(e * e).reshape(1, 1)


def _pick_tb(B, H, W, itemsize):
    """Largest batch-chunk that fits a conservative VMEM budget (all TPU gens)."""
    budget = 24 * 1024 * 1024
    per_b = (2 * 2 * 3 * H * W * itemsize        # 2 inputs x 2 pipeline buffers
             + (H + 2) * (W + 2) * 4             # padded f32 scratch plane
             + 8 * H * W * 4)                    # slack for live f32 values
    return int(max(1, min(B, budget // per_b)))


def edge_loss(result, target):
    """Pallas equivalent of EdgeLoss.forward. result/target: (B, 3, H, W)."""
    B, C, H, W = result.shape
    assert C == 3, "EdgeLoss expects RGB inputs (3 channels)"
    assert target.shape == result.shape

    itemsize = jnp.dtype(result.dtype).itemsize
    TB = _pick_tb(B, H, W, itemsize)
    num_chunks = -(-B // TB)

    kernel = functools.partial(_edge_loss_kernel, H=H, W=W, B=B, TB=TB)
    partial_sums = pl.pallas_call(
        kernel,
        out_shape=jax.ShapeDtypeStruct((num_chunks, 1), jnp.float32),
        grid_spec=pltpu.PrefetchScalarGridSpec(
            num_scalar_prefetch=0,
            grid=(num_chunks,),
            in_specs=[
                pl.BlockSpec((TB, 3, H, W), lambda i: (i, 0, 0, 0)),
                pl.BlockSpec((TB, 3, H, W), lambda i: (i, 0, 0, 0)),
            ],
            out_specs=pl.BlockSpec((1, 1), lambda i: (i, 0)),
            scratch_shapes=[pltpu.VMEM((TB, H + 2, W + 2), jnp.float32)],
        ),
        compiler_params=pltpu.CompilerParams(
            dimension_semantics=("parallel",),
            vmem_limit_bytes=48 * 1024 * 1024,
        ),
    )(result, target)

    # Final reduction of per-chunk partials (f32) and mean normalization.
    return jnp.sum(partial_sums) / jnp.float32(B * H * W)


def _edge_loss_ref(result, target):
    """Pure-JAX reference for validation (matches the PyTorch module)."""
    def gray(x):
        return 0.2989 * x[:, 0] + 0.587 * x[:, 1] + 0.114 * x[:, 2]  # (B, H, W)

    def edge(g):
        B, H, W = g.shape
        gp = jnp.pad(g, ((0, 0), (1, 1), (1, 1)))
        e = 8.0 * gp[:, 1:1 + H, 1:1 + W]
        for di in (0, 1, 2):
            for dj in (0, 1, 2):
                if di == 1 and dj == 1:
                    continue
                e = e - gp[:, di:di + H, dj:dj + W]
        return e

    er = edge(gray(result.astype(jnp.float32)))
    et = edge(gray(target.astype(jnp.float32)))
    return jnp.mean((er - et) ** 2)


if __name__ == "__main__":
    key = jax.random.PRNGKey(0)
    k1, k2 = jax.random.split(key)
    B, C, H, W = 2, 3, 16, 16
    result = jax.random.normal(k1, (B, C, H, W), dtype=jnp.float32)
    target = jax.random.normal(k2, (B, C, H, W), dtype=jnp.float32)

    loss = jax.block_until_ready(edge_loss(result, target))
    ref = jax.block_until_ready(_edge_loss_ref(result, target))
    assert jnp.allclose(loss, ref, rtol=1e-4, atol=1e-4), (loss, ref)

    print("KERNEL_OK")
</pallas_src>

<mosaic_0001>
module attributes {stable_mosaic.version = 11 : i64} {
  func.func @_edge_loss_kernel(%arg0: i32, %arg1: memref<2x3x16x16xf32, #tpu.memory_space<vmem>>, %arg2: memref<2x3x16x16xf32, #tpu.memory_space<vmem>>, %arg3: memref<1x1xf32, #tpu.memory_space<vmem>>, %arg4: memref<2x18x18xf32, #tpu.memory_space<vmem>>) attributes {dimension_semantics = [#tpu.dimension_semantics<parallel>], iteration_bounds = array<i64: 1>, scalar_prefetch = 0 : i64, scratch_operands = 1 : i64, tpu.core_type = #tpu.core_type<tc>, window_params = [{transform_indices = @transform_0, window_bounds = array<i64: 2, 3, 16, 16>}, {transform_indices = @transform_1, window_bounds = array<i64: 2, 3, 16, 16>}, {transform_indices = @transform_2, window_bounds = array<i64: 1, 1>}]} {
    %c0 = arith.constant 0 : index
    %c0_0 = arith.constant 0 : index
    %c0_1 = arith.constant 0 : index
    %c0_2 = arith.constant 0 : index
    %0 = vector.load %arg1[%c0, %c0_0, %c0_1, %c0_2] : memref<2x3x16x16xf32, #tpu.memory_space<vmem>>, vector<2x1x16x16xf32>
    %1 = vector.shape_cast %0 : vector<2x1x16x16xf32> to vector<2x16x16xf32>
    %c0_3 = arith.constant 0 : index
    %c0_4 = arith.constant 0 : index
    %c0_5 = arith.constant 0 : index
    %c0_6 = arith.constant 0 : index
    %2 = vector.load %arg2[%c0_3, %c0_4, %c0_5, %c0_6] : memref<2x3x16x16xf32, #tpu.memory_space<vmem>>, vector<2x1x16x16xf32>
    %3 = vector.shape_cast %2 : vector<2x1x16x16xf32> to vector<2x16x16xf32>
    %4 = arith.subf %1, %3 : vector<2x16x16xf32>
    %cst = arith.constant 2.989000e-01 : f32
    %5 = vector.broadcast %cst : f32 to vector<2x16x16xf32>
    %6 = arith.mulf %5, %4 : vector<2x16x16xf32>
    %c0_7 = arith.constant 0 : index
    %c1 = arith.constant 1 : index
    %c0_8 = arith.constant 0 : index
    %c0_9 = arith.constant 0 : index
    %7 = vector.load %arg1[%c0_7, %c1, %c0_8, %c0_9] : memref<2x3x16x16xf32, #tpu.memory_space<vmem>>, vector<2x1x16x16xf32>
    %8 = vector.shape_cast %7 : vector<2x1x16x16xf32> to vector<2x16x16xf32>
    %c0_10 = arith.constant 0 : index
    %c1_11 = arith.constant 1 : index
    %c0_12 = arith.constant 0 : index
    %c0_13 = arith.constant 0 : index
    %9 = vector.load %arg2[%c0_10, %c1_11, %c0_12, %c0_13] : memref<2x3x16x16xf32, #tpu.memory_space<vmem>>, vector<2x1x16x16xf32>
    %10 = vector.shape_cast %9 : vector<2x1x16x16xf32> to vector<2x16x16xf32>
    %11 = arith.subf %8, %10 : vector<2x16x16xf32>
    %cst_14 = arith.constant 5.870000e-01 : f32
    %12 = vector.broadcast %cst_14 : f32 to vector<2x16x16xf32>
    %13 = arith.mulf %12, %11 : vector<2x16x16xf32>
    %14 = arith.addf %6, %13 : vector<2x16x16xf32>
    %c0_15 = arith.constant 0 : index
    %c2 = arith.constant 2 : index
    %c0_16 = arith.constant 0 : index
    %c0_17 = arith.constant 0 : index
    %15 = vector.load %arg1[%c0_15, %c2, %c0_16, %c0_17] : memref<2x3x16x16xf32, #tpu.memory_space<vmem>>, vector<2x1x16x16xf32>
    %16 = vector.shape_cast %15 : vector<2x1x16x16xf32> to vector<2x16x16xf32>
    %c0_18 = arith.constant 0 : index
    %c2_19 = arith.constant 2 : index
    %c0_20 = arith.constant 0 : index
    %c0_21 = arith.constant 0 : index
    %17 = vector.load %arg2[%c0_18, %c2_19, %c0_20, %c0_21] : memref<2x3x16x16xf32, #tpu.memory_space<vmem>>, vector<2x1x16x16xf32>
    %18 = vector.shape_cast %17 : vector<2x1x16x16xf32> to vector<2x16x16xf32>
    %19 = arith.subf %16, %18 : vector<2x16x16xf32>
    %cst_22 = arith.constant 1.140000e-01 : f32
    %20 = vector.broadcast %cst_22 : f32 to vector<2x16x16xf32>
    %21 = arith.mulf %20, %19 : vector<2x16x16xf32>
    %22 = arith.addf %14, %21 : vector<2x16x16xf32>
    %cst_23 = arith.constant 0.000000e+00 : f32
    %23 = vector.broadcast %cst_23 : f32 to vector<2x18x18xf32>
    %c0_24 = arith.constant 0 : index
    %c0_25 = arith.constant 0 : index
    %c0_26 = arith.constant 0 : index
    %24 = vector.load %arg4[%c0_24, %c0_25, %c0_26] : memref<2x18x18xf32, #tpu.memory_space<vmem>>, vector<2x18x18xf32>
    tpu.vector_store %arg4[%c0_24, %c0_25, %c0_26], %23 {strides = array<i32>} : memref<2x18x18xf32, #tpu.memory_space<vmem>>, vector<2x18x18xf32>,
    %c0_27 = arith.constant 0 : index
    %c1_28 = arith.constant 1 : index
    %c1_29 = arith.constant 1 : index
    %25 = vector.load %arg4[%c0_27, %c1_28, %c1_29] : memref<2x18x18xf32, #tpu.memory_space<vmem>>, vector<2x16x16xf32>
    tpu.vector_store %arg4[%c0_27, %c1_28, %c1_29], %22 {strides = array<i32>} : memref<2x18x18xf32, #tpu.memory_space<vmem>>, vector<2x16x16xf32>,
    %c0_30 = arith.constant 0 : index
    %c0_31 = arith.constant 0 : index
    %c0_32 = arith.constant 0 : index
    %26 = vector.load %arg4[%c0_30, %c0_31, %c0_32] : memref<2x18x18xf32, #tpu.memory_space<vmem>>, vector<2x18x18xf32>
    %27 = vector.extract_strided_slice %26 {offsets = [0, 0, 0], sizes = [2, 18, 16], strides = [1, 1, 1]} : vector<2x18x18xf32> to vector<2x18x16xf32>
    %28 = vector.extract_strided_slice %26 {offsets = [0, 0, 1], sizes = [2, 18, 16], strides = [1, 1, 1]} : vector<2x18x18xf32> to vector<2x18x16xf32>
    %29 = arith.addf %27, %28 : vector<2x18x16xf32>
    %30 = vector.extract_strided_slice %26 {offsets = [0, 0, 2], sizes = [2, 18, 16], strides = [1, 1, 1]} : vector<2x18x18xf32> to vector<2x18x16xf32>
    %31 = arith.addf %29, %30 : vector<2x18x16xf32>
    %32 = vector.extract_strided_slice %31 {offsets = [0, 0, 0], sizes = [2, 16, 16], strides = [1, 1, 1]} : vector<2x18x16xf32> to vector<2x16x16xf32>
    %33 = vector.extract_strided_slice %31 {offsets = [0, 1, 0], sizes = [2, 16, 16], strides = [1, 1, 1]} : vector<2x18x16xf32> to vector<2x16x16xf32>
    %34 = arith.addf %32, %33 : vector<2x16x16xf32>
    %35 = vector.extract_strided_slice %31 {offsets = [0, 2, 0], sizes = [2, 16, 16], strides = [1, 1, 1]} : vector<2x18x16xf32> to vector<2x16x16xf32>
    %36 = arith.addf %34, %35 : vector<2x16x16xf32>
    %cst_33 = arith.constant 9.000000e+00 : f32
    %37 = vector.broadcast %cst_33 : f32 to vector<2x16x16xf32>
    %38 = arith.mulf %37, %22 : vector<2x16x16xf32>
    %39 = arith.subf %38, %36 : vector<2x16x16xf32>
    %40 = arith.mulf %39, %39 : vector<2x16x16xf32>
    %41 = vector.shape_cast %40 : vector<2x16x16xf32> to vector<1x2x16x16xf32>
    %cst_34 = arith.constant dense<0.000000e+00> : vector<1xf32>
    %42 = vector.multi_reduction <add>, %41, %cst_34 [1, 2, 3] : vector<1x2x16x16xf32> to vector<1xf32>
    %43 = vector.shape_cast %42 : vector<1xf32> to vector<1x1x1x1xf32>
    %44 = vector.extract %43[0, 0, 0, 0] : f32 from vector<1x1x1x1xf32>
    %45 = vector.broadcast %44 : f32 to vector<1x1xf32>
    %c0_35 = arith.constant 0 : index
    %c0_36 = arith.constant 0 : index
    %46 = vector.load %arg3[%c0_35, %c0_36] : memref<1x1xf32, #tpu.memory_space<vmem>>, vector<1x1xf32>
    tpu.vector_store %arg3[%c0_35, %c0_36], %45 {strides = array<i32>} : memref<1x1xf32, #tpu.memory_space<vmem>>, vector<1x1xf32>,
    return
  }
  func.func @transform_0(%arg0: i32) -> (i32, i32, i32, i32) {
    %c0_i32 = arith.constant 0 : i32
    %c0_i32_0 = arith.constant 0 : i32
    %c0_i32_1 = arith.constant 0 : i32
    %c0_i32_2 = arith.constant 0 : i32
    return %arg0, %c0_i32, %c0_i32_0, %c0_i32_1 : i32, i32, i32, i32
  }
  func.func @transform_1(%arg0: i32) -> (i32, i32, i32, i32) {
    %c0_i32 = arith.constant 0 : i32
    %c0_i32_0 = arith.constant 0 : i32
    %c0_i32_1 = arith.constant 0 : i32
    %c0_i32_2 = arith.constant 0 : i32
    return %arg0, %c0_i32, %c0_i32_0, %c0_i32_1 : i32, i32, i32, i32
  }
  func.func @transform_2(%arg0: i32) -> (i32, i32) {
    %c0_i32 = arith.constant 0 : i32
    %c0_i32_0 = arith.constant 0 : i32
    return %arg0, %c0_i32 : i32, i32
  }
}

</mosaic_0001>

<bundles_post_ra>
// kernel: tpu_custom_call.1
= control target key start
LH: loop header
LB: loop body
LE: loop exit
PB: predicated region body
PF: predicated region fallthrough
CT: control target
= control target key end

     0   :  { %7 = vsyncpa [#allocation4], 0  ;;  %s452_s0 = inlined_call_operand.hbm [shape: f32[2,3,16,16], index: 0, kind: input, shape index: {}]   ;;  %s453_s1 = inlined_call_operand.hbm [shape: f32[2,3,16,16], index: 1, kind: input, shape index: {}]   ;;  %s454_s2 = inlined_call_operand.hbm [shape: f32[1,1], index: 2, kind: output, shape index: {}]  }
   0x1   :  { %8 = vsyncpa [#allocation7], 0 }
   0x2   :  { %9 = vsyncpa [#allocation5], 0  ;;  %s364_s9 = smov [#allocation3]   ;;  %s292_s13 = scalar_lea.hbm %s452_s0, 1536 }
   0x3   :  { %s15_s10 = sshll.u32 %s364_s9, 4  ;;  %p293_p0 = scmp.ne.s32.totalorder %s452_s0, %s292_s13  ;;  %s16_s10 = int_to_ptr.vmem [resolvable:$true] %s15_s10 }
   0x4   :  { %p296_p1 = scmp.lt.u32.totalorder %s292_s13, %s452_s0 }
   0x6   :  { %p298_p2 = pnand %p296_p1, %p293_p0 }
   0x8   :  { %301 = shalt.err (!%p298_p2)
}
   0x9   :  { %s302_s18 = scalar_lea.vmem %s16_s10, 1536  ;;  %p307_p4 = scmp.lt.s32.totalorder %s16_s10, %s16_s10 }
   0xa   :  { %p303_p3 = scmp.ne.s32.totalorder %s16_s10, %s302_s18  ;;  %p308_p5 = scmp.lt.s32.totalorder %s302_s18, %s302_s18 }
   0xc   :  { %p309_p6 = por %p308_p5, %p307_p4 }
   0xe   :  { %p310_p7 = pnand %p309_p6, %p303_p3 }
  0x10   :  { %313 = shalt.err (!%p310_p7)
}
  0x11   :  { %s365_s19 = smov 128   ;;  %s366_s20 = smov 8  }
  0x12   :  { %21 = dma.hbm_to_vmem [thread:$0]  %s452_s0, 1536, %s16_s10, [#allocation4], %s365_s19, %s365_s19, %s366_s20  }
  0x13   :  { %s367_s23 = smov [#allocation6]   ;;  %s314_s27 = scalar_lea.hbm %s453_s1, 1536 }
  0x14   :  { %s27_s24 = sshll.u32 %s367_s23, 4  ;;  %p315_p8 = scmp.ne.s32.totalorder %s453_s1, %s314_s27  ;;  %s28_s24 = int_to_ptr.vmem [resolvable:$true] %s27_s24 }
  0x15   :  { %p318_p9 = scmp.lt.u32.totalorder %s314_s27, %s453_s1 }
  0x17   :  { %p320_p10 = pnand %p318_p9, %p315_p8 }
  0x19   :  { %323 = shalt.err (!%p320_p10)
}
  0x1a   :  { %s324_s4 = scalar_lea.vmem %s28_s24, 1536  ;;  %p329_p12 = scmp.lt.s32.totalorder %s28_s24, %s28_s24 }
  0x1b   :  { %p325_p11 = scmp.ne.s32.totalorder %s28_s24, %s324_s4  ;;  %p330_p13 = scmp.lt.s32.totalorder %s324_s4, %s324_s4 }
  0x1d   :  { %p331_p0 = por %p330_p13, %p329_p12 }
  0x1f   :  { %p332_p1 = pnand %p331_p0, %p325_p11 }
  0x21   :  { %335 = shalt.err (!%p332_p1)
}
  0x22   :  { %33 = dma.hbm_to_vmem [thread:$0]  %s453_s1, 1536, %s28_s24, [#allocation7], %s365_s19, %s365_s19, %s366_s20  }
  0x23   :  { %358 = dma.done.wait [#allocation4], 1536  }
  0x24   :  { %359 = vsyncadd [#allocation4], 4294965760 }
  0x25   :  { %360 = dma.done.wait [#allocation7], 1536  }
  0x26   :  { %361 = vsyncadd [#allocation7], 4294965760  ;;  %vm100_vm0 = vcmask 146432   ;;  %v368_v0 = vmov 0.0   ;;  %vm103_vm1 = vcmask 140288   ;;  %v40_v1 = vld [vmem:[#allocation3] sm:$0xff] }
  0x27   :  { %101 = vst.msk [vmem:[#allocation2] sm:$0xff] %vm100_vm0, %v368_v0  ;;  %102 = vst.msk [vmem:[#allocation2 + $0x8] sm:$0xff] %vm100_vm0, %v368_v0  ;;  %v44_v2 = vld [vmem:[#allocation6] sm:$0xff]  ;;  %v57_v3 = vld [vmem:[#allocation3 + $0x10] sm:$0xff]  ;;  %s369_s1 = smov 1   ;;  %vm124_vm2 = vcmask 138248  }
  0x28   :  { %105 = vst.msk [vmem:[#allocation2 + $0x18] sm:$0xff] %vm100_vm0, %v368_v0  ;;  %106 = vst.msk [vmem:[#allocation2 + $0x20] sm:$0xff] %vm100_vm0, %v368_v0  ;;  %v48_v4 = vsub.f32 %v40_v1, %v44_v2  ;;  %v62_v5 = vld [vmem:[#allocation6 + $0x10] sm:$0xff]  ;;  %v79_v6 = vld [vmem:[#allocation3 + $0x20] sm:$0xff]  ;;  %s370_s6 = smov 127   ;;  %s371_s7 = smov 126  }
  0x29   :  { %104 = vst.msk [vmem:[#allocation2 + $0x10] sm:$0x3] %vm103_vm1, %v368_v0  ;;  %107 = vst.msk [vmem:[#allocation2 + $0x28] sm:$0x3] %vm103_vm1, %v368_v0  ;;  %v84_v7 = vld [vmem:[#allocation6 + $0x20] sm:$0xff]  ;;  %v66_v8 = vsub.f32 %v57_v3, %v62_v5  ;;  %v42_v10 = vld [vmem:[#allocation3 + $0x30] sm:$0xff] }
  0x2a   :  { %v88_v9 = vsub.f32 %v79_v6, %v84_v7  ;;  %v46_v11 = vld [vmem:[#allocation6 + $0x30] sm:$0xff]  ;;  %v59_v12 = vld [vmem:[#allocation3 + $0x40] sm:$0xff]  ;;  %v52_v13 = vmul.f32 0.2989, %v48_v4  ;;  %v41_v22 = vld [vmem:[#allocation3 + $0x8] sm:$0xff]  ;;  %vm195_vm3 = vcmask 1046528  }
  0x2b   :  { %v50_v14 = vsub.f32 %v42_v10, %v46_v11  ;;  %v64_v15 = vld [vmem:[#allocation6 + $0x40] sm:$0xff]  ;;  %v81_v16 = vld [vmem:[#allocation3 + $0x50] sm:$0xff]  ;;  %v70_v18 = vmul.f32 0.587, %v66_v8  ;;  %v45_v23 = vld [vmem:[#allocation6 + $0x8] sm:$0xff]  ;;  %vm214_vm4 = vcmask 1045504  }
  0x2c   :  { %v86_v17 = vld [vmem:[#allocation6 + $0x50] sm:$0xff]  ;;  %v92_v19 = vmul.f32 0.114, %v88_v9  ;;  %v68_v20 = vsub.f32 %v59_v12, %v64_v15  ;;  %v49_v25 = vsub.f32 %v41_v22, %v45_v23  ;;  %v58_v26 = vld [vmem:[#allocation3 + $0x18] sm:$0xff]  ;;  %v80_v28 = vld [vmem:[#allocation3 + $0x28] sm:$0xff]  ;;  %vm245_vm5 = vcmask 130048  }
  0x2d   :  { %v90_v21 = vsub.f32 %v81_v16, %v86_v17  ;;  %v54_v24 = vmul.f32 0.2989, %v50_v14  ;;  %v63_v27 = vld [vmem:[#allocation6 + $0x18] sm:$0xff]  ;;  %v74_v29 = vadd.f32 %v70_v18, %v52_v13  ;;  %v85_v33 = vld [vmem:[#allocation6 + $0x28] sm:$0xff]  ;;  %s372_s8 = smov [#allocation8]   ;;  %vm263_vm6 = vcmask 0  }
  0x2e   :  { %v72_v30 = vmul.f32 0.587, %v68_v20  ;;  %v67_v32 = vsub.f32 %v58_v26, %v63_v27  ;;  %v43_v34 = vld [vmem:[#allocation3 + $0x38] sm:$0xff]  ;;  %v53_v35 = vmul.f32 0.2989, %v49_v25  ;;  %v89_v36 = vsub.f32 %v80_v28, %v85_v33  ;;  %v60_v38 = vld [vmem:[#allocation3 + $0x48] sm:$0xff] }
  0x2f   :  { %v94_v31 = vmul.f32 0.114, %v90_v21  ;;  %v47_v37 = vld [vmem:[#allocation6 + $0x38] sm:$0xff]  ;;  %v65_v39 = vld [vmem:[#allocation6 + $0x48] sm:$0xff]  ;;  %v412_v40 = vadd.f32 %v92_v19, %v74_v29  ;;  %s271_s9 = sshll.u32 %s372_s8, 4  ;;  %s272_s9 = int_to_ptr.vmem [resolvable:$true] %s271_s9 }
  0x30   :  { %v76_v41 = vadd.f32 %v72_v30, %v54_v24  ;;  %v71_v42 = vmul.f32 0.587, %v67_v32  ;;  %v51_v43 = vsub.f32 %v43_v34, %v47_v37  ;;  %v82_v44 = vld [vmem:[#allocation3 + $0x58] sm:$0xff]  ;;  %v93_v46 = vmul.f32 0.114, %v89_v36  ;;  %s336_s11 = scalar_lea.vmem %s272_s9, 16  ;;  %p341_p3 = scmp.lt.s32.totalorder %s272_s9, %s272_s9 }
  0x31   :  { %v87_v45 = vld [vmem:[#allocation6 + $0x58] sm:$0xff]  ;;  %v69_v47 = vsub.f32 %v60_v38, %v65_v39  ;;  %112 = vrot.lane.b32.xlu0 %v412_v40, %s369_s1  ;;  %v233_v23 = vmul.f32 9.0, %v412_v40  ;;  %p337_p2 = scmp.ne.s32.totalorder %s272_s9, %s336_s11  ;;  %s340_s12 = scalar_lea.vmem %s272_s9, 32 }
  0x32   :  { %v91_v48 = vsub.f32 %v82_v44, %v87_v45  ;;  %v415_v49 = vadd.f32 %v94_v31, %v76_v41  ;;  %v75_v50 = vadd.f32 %v71_v42, %v53_v35  ;;  %v55_v51 = vmul.f32 0.2989, %v51_v43  ;;  %p342_p4 = scmp.lt.s32.totalorder %s340_s12, %s336_s11 }
  0x33   :  { %v73_v52 = vmul.f32 0.587, %v69_v47 }
  0x34   :  { %v95_v53 = vmul.f32 0.114, %v91_v48  ;;  %116 = vrot.lane.b32.xlu1 %v415_v49, %s369_s1  ;;  %v418_v54 = vadd.f32 %v93_v46, %v75_v50  ;;  %v235_v50 = vmul.f32 9.0, %v415_v49  ;;  %p343_p5 = por %p342_p4, %p341_p3 }
  0x35   :  { %v77_v55 = vadd.f32 %v73_v52, %v55_v51 }
  0x36   :  { %114 = vrot.lane.b32.xlu0 %v418_v54, %s369_s1  ;;  %v234_v33 = vmul.f32 9.0, %v418_v54  ;;  %p344_p6 = pnand %p343_p5, %p337_p2 }
  0x37   :  { %v421_v56 = vadd.f32 %v95_v53, %v77_v55 }
  0x39   :  { %118 = vrot.lane.b32.xlu1 %v421_v56, %s369_s1 }
  0xa3   :  { %v113_v57 = vpop.permute.xlu0 %112 }
  0xa4   :  { %125 = vst.msk [vmem:[#allocation2 + $0x1] sm:$0xff] %vm124_vm2, %v113_v57 }
  0xa6   :  { %v117_v58 = vpop.permute.xlu1 %116 }
  0xa7   :  { %127 = vst.msk [vmem:[#allocation2 + $0x19] sm:$0xff] %vm124_vm2, %v117_v58 }
  0xa8   :  { %v115_v59 = vpop.permute.xlu0 %114 }
  0xa9   :  { %126 = vst.msk [vmem:[#allocation2 + $0x9] sm:$0xff] %vm124_vm2, %v115_v59 }
  0xab   :  { %v119_v60 = vpop.permute.xlu1 %118  ;;  %v129_v61 = vld [vmem:[#allocation2] sm:$0xff] }
  0xac   :  { %128 = vst.msk [vmem:[#allocation2 + $0x21] sm:$0xff] %vm124_vm2, %v119_v60  ;;  %141 = vrot.lane.b32.xlu0 %v129_v61, %s370_s6  ;;  %v236_v60 = vmul.f32 9.0, %v421_v56 }
  0xae   :  { %v132_v1 = vld [vmem:[#allocation2 + $0x18] sm:$0xff] }
  0xb0   :  { %v131_v62 = vld [vmem:[#allocation2 + $0x10] sm:$0x3]  ;;  %v130_v63 = vld [vmem:[#allocation2 + $0x8] sm:$0xff] }
  0xb1   :  { %145 = vrot.lane.b32.xlu0 %v131_v62, %s370_s6  ;;  %143 = vrot.lane.b32.xlu1 %v130_v63, %s370_s6 }
  0xb3   :  { %v133_v0 = vld [vmem:[#allocation2 + $0x20] sm:$0xff]  ;;  %v134_v2 = vld [vmem:[#allocation2 + $0x28] sm:$0x3] }
  0xb5   :  { %149 = vrot.lane.b32.xlu0 %v133_v0, %s370_s6  ;;  %147 = vrot.lane.b32.xlu1 %v132_v1, %s370_s6 }
  0xb9   :  { %167 = vrot.lane.b32.xlu0 %v130_v63, %s371_s7  ;;  %165 = vrot.lane.b32.xlu1 %v129_v61, %s371_s7 }
  0xbd   :  { %151 = vrot.lane.b32.xlu0 %v134_v2, %s370_s6  ;;  %169 = vrot.lane.b32.xlu1 %v131_v62, %s371_s7 }
  0xc1   :  { %173 = vrot.lane.b32.xlu0 %v133_v0, %s371_s7  ;;  %171 = vrot.lane.b32.xlu1 %v132_v1, %s371_s7 }
  0xc5   :  { %175 = vrot.lane.b32.xlu1 %v134_v2, %s371_s7 }
 0x11e   :  { %v142_v3 = vpop.permute.xlu0 %141 }
 0x11f   :  { %v159_v8 = vadd.f32 %v142_v3, %v129_v61 }
 0x123   :  { %v144_v4 = vpop.permute.xlu1 %143  ;;  %v146_v5 = vpop.permute.xlu0 %145 }
 0x124   :  { %v160_v9 = vadd.f32 %v144_v4, %v130_v63  ;;  %v161_v14 = vadd.f32 %v146_v5, %v131_v62 }
 0x127   :  { %v148_v6 = vpop.permute.xlu1 %147  ;;  %v150_v7 = vpop.permute.xlu0 %149 }
 0x128   :  { %v162_v24 = vadd.f32 %v148_v6, %v132_v1  ;;  %v163_v26 = vadd.f32 %v150_v7, %v133_v0 }
 0x12b   :  { %v166_v10 = vpop.permute.xlu1 %165  ;;  %v168_v11 = vpop.permute.xlu0 %167 }
 0x12c   :  { %v183_v12 = vadd.f32 %v166_v10, %v159_v8  ;;  %v184_v13 = vadd.f32 %v168_v11, %v160_v9 }
 0x12e   :  { %v196_v15 = vrot.slane %v183_v12, 1  ;;  %v215_v16 = vrot.slane %v183_v12, 2  ;;  %v197_v17 = vrot.slane %v184_v13, 1  ;;  %v216_v18 = vrot.slane %v184_v13, 2 }
 0x12f   :  { %v170_v19 = vpop.permute.xlu1 %169  ;;  %v152_v20 = vpop.permute.xlu0 %151 }
 0x130   :  { %v198_v21 = vsel %vm195_vm3, %v196_v15, %v197_v17  ;;  %v185_v22 = vadd.f32 %v170_v19, %v161_v14  ;;  %v217_v27 = vsel %vm214_vm4, %v215_v16, %v216_v18  ;;  %v164_v39 = vadd.f32 %v152_v20, %v134_v2 }
 0x131   :  { %v210_v25 = vadd.f32 %v198_v21, %v183_v12 }
 0x132   :  { %v199_v28 = vrot.slane %v185_v22, 1  ;;  %v218_v29 = vrot.slane %v185_v22, 2 }
 0x133   :  { %v229_v30 = vadd.f32 %v217_v27, %v210_v25  ;;  %v172_v31 = vpop.permute.xlu1 %171  ;;  %v174_v32 = vpop.permute.xlu0 %173 }
 0x134   :  { %v200_v34 = vsel %vm195_vm3, %v197_v17, %v199_v28  ;;  %v186_v35 = vadd.f32 %v172_v31, %v162_v24  ;;  %v187_v36 = vadd.f32 %v174_v32, %v163_v26  ;;  %v219_v38 = vsel %vm214_vm4, %v216_v18, %v218_v29 }
 0x135   :  { %v211_v37 = vadd.f32 %v200_v34, %v184_v13  ;;  %v237_v40 = vsub.f32 %v233_v23, %v229_v30 }
 0x136   :  { %v201_v41 = vrot.slane %v186_v35, 1  ;;  %v220_v42 = vrot.slane %v186_v35, 2  ;;  %v202_v43 = vrot.slane %v187_v36, 1  ;;  %v221_v44 = vrot.slane %v187_v36, 2 }
 0x137   :  { %v230_v45 = vadd.f32 %v219_v38, %v211_v37  ;;  %v176_v46 = vpop.permute.xlu1 %175  ;;  %v241_v53 = vmul.f32 %v237_v40, %v237_v40 }
 0x138   :  { %v203_v47 = vsel %vm195_vm3, %v201_v41, %v202_v43  ;;  %v188_v48 = vadd.f32 %v176_v46, %v164_v39  ;;  %v222_v54 = vsel %vm214_vm4, %v220_v42, %v221_v44 }
 0x139   :  { %v212_v51 = vadd.f32 %v203_v47, %v186_v35  ;;  %v238_v52 = vsub.f32 %v234_v33, %v230_v45  ;;  %v246_v0 = vsel %vm245_vm5, %v241_v53, 0.0 }
 0x13a   :  { %v204_v55 = vrot.slane %v188_v48, 1  ;;  %v223_v57 = vrot.slane %v188_v48, 2 }
 0x13b   :  { %v231_v58 = vadd.f32 %v222_v54, %v212_v51  ;;  %v242_v59 = vmul.f32 %v238_v52, %v238_v52 }
 0x13c   :  { %v205_v61 = vsel %vm195_vm3, %v202_v43, %v204_v55  ;;  %v224_v1 = vsel %vm214_vm4, %v221_v44, %v223_v57 }
 0x13d   :  { %v213_v62 = vadd.f32 %v205_v61, %v187_v36  ;;  %v239_v63 = vsub.f32 %v235_v50, %v231_v58  ;;  %v247_v49 = vsel %vm245_vm5, %v242_v59, 0.0 }
 0x13e   :  { %v248_v2 = vadd.f32 %v247_v49, %v246_v0 }
 0x13f   :  { %v232_v3 = vadd.f32 %v224_v1, %v213_v62  ;;  %v243_v4 = vmul.f32 %v239_v63, %v239_v63 }
 0x141   :  { %v240_v5 = vsub.f32 %v236_v60, %v232_v3  ;;  %v249_v6 = vsel %vm245_vm5, %v243_v4, 0.0 }
 0x142   :  { %v250_v7 = vadd.f32 %v249_v6, %v248_v2 }
 0x143   :  { %v244_v8 = vmul.f32 %v240_v5, %v240_v5 }
 0x145   :  { %v251_v56 = vsel %vm245_vm5, %v244_v8, 0.0 }
 0x146   :  { %v252_v9 = vadd.f32 %v251_v56, %v250_v7 }
 0x148   :  { %253 = vadd.xlane.f32.xlu0 %v252_v9 }
 0x1d5   :  { %v254_v10 = vpop.xlane.xlu0 %253 }
 0x1d6   :  { %v255_v11 = vrot.slane %v254_v10, 4 }
 0x1d8   :  { %v256_v12 = vadd.f32 %v255_v11, %v254_v10 }
 0x1da   :  { %v257_v13 = vrot.slane %v256_v12, 2 }
 0x1dc   :  { %v258_v14 = vadd.f32 %v257_v13, %v256_v12 }
 0x1de   :  { %v259_v15 = vrot.slane %v258_v14, 1 }
 0x1e0   :  { %v260_v16 = vadd.f32 %v259_v15, %v258_v14 }
 0x1e2   :  { %281 = vpush %v260_v16 }
 0x213   :  { %s282_s10 = spop %281 }
 0x214   :  { %v262_v17 = vstv %s282_s10 }
 0x215   :  { %264 = vst.msk [vmem:[#allocation8] sm:$0x1] %vm263_vm6, %v262_v17 }
 0x216   :  { %347 = shalt.err (!%p344_p6)
}
 0x217   :  { %s348_s15 = scalar_lea.hbm %s454_s2, 16 }
 0x218   :  { %p349_p7 = scmp.ne.s32.totalorder %s454_s2, %s348_s15  ;;  %p352_p8 = scmp.lt.u32.totalorder %s348_s15, %s454_s2 }
 0x21a   :  { %p354_p9 = pnand %p352_p8, %p349_p7 }
 0x21c   :  { %357 = shalt.err (!%p354_p9)
}
 0x21d   :  { %274 = dma.vmem_to_hbm [thread:$0]  %s272_s9, 16, %s454_s2, [#allocation5]  }
 0x21e   :  { %362 = dma.done.wait [#allocation5], 16  }
 0x21f   :  { %363 = vsyncadd [#allocation5], 4294967280 }
 0x220   :  { %278 = vsyncpa [#allocation4], 1 }
 0x221   :  { %279 = vsyncpa [#allocation7], 1 }
 0x222   :  { %280 = vsyncpa [#allocation5], 1 }

</bundles_post_ra>
